<compile_context>
chip_gen: v7x
topology: tpu7x:2x2x1
jax: 0.10.0
libtpu: 0.0.40
codegen_flags: <defaults>
</compile_context>

<pallas_src>
import numpy as np
import jax
import jax.numpy as jnp
from jax import lax
from jax.experimental import pallas as pl
from jax.experimental.pallas import tpu as pltpu


# ----------------------------------------------------------------------------- kernel
def actor_kernel(x_ref, w1f_ref, wmu_ref, scale_ref, bias_ref, o_ref):
    width = wmu_ref.shape[0]          # static
    mm_dtype = w1f_ref.dtype          # matmul operand dtype (f32 or bf16)

    x = x_ref[...].astype(mm_dtype)                                        # (B, S)

    # fused fc1 / fc1_copy: one MXU pass over the (S, 2*width) weight
    pre_both = jnp.dot(x, w1f_ref[...],
                       preferred_element_type=jnp.float32)                 # (B, 2W) f32
    pre = pre_both[:, :width]            # static 128-aligned slices (width % 128 == 0)
    pre_c = pre_both[:, width:]

    # elementwise math in f32 (exp/erf/tanh go to the EUP slot; VPU stays f32)
    inv_sqrt_2pi = jnp.float32(1.0 / np.sqrt(2.0 * np.pi))
    inv_sqrt_2 = jnp.float32(1.0 / np.sqrt(2.0))
    phi = jnp.exp(-0.5 * pre * pre) * inv_sqrt_2pi
    Phi = 0.5 * (1.0 + lax.erf(pre * inv_sqrt_2))
    # h = pre*Phi + (pre_c - pre)*(Phi + pre*phi)  ==  Phi*pre_c + (pre*phi)*(pre_c - pre)
    h = Phi * pre_c + (pre * phi) * (pre_c - pre)                          # (B, W) f32

    # fc_mu head; 1/sqrt(width) is folded into wmu at prep time.
    # wmu is zero-padded to 128 lanes -> full-lane unmasked store of o_ref.
    mu_pre = jnp.dot(h.astype(mm_dtype), wmu_ref[...],
                     preferred_element_type=jnp.float32)                   # (B, 128) f32
    mu = jnp.tanh(mu_pre)

    o_ref[...] = mu * scale_ref[...] + bias_ref[...]


# ----------------------------------------------------------------------------- params
LANE = 128


def prepare_actor_params(w1, w1_copy, w_mu, action_scale, action_bias,
                         matmul_dtype=jnp.float32):
    """One-time (init-time) parameter prep — NOT part of the per-call forward path.

    PyTorch layouts in: w1, w1_copy: (width, S); w_mu: (A, width); scale/bias: (A,).
    Returns (w1_fused (S, 2W), wmu_pad (width, A_pad), scale_pad (1, A_pad),
             bias_pad (1, A_pad), A) with:
      * fc1 / fc1_copy fused along the output dim,
      * 1/sqrt(width) folded into wmu (in f32, before any cast),
      * the fc_mu head zero-padded to a 128-lane multiple (padded bias lanes = 0,
        so padded outputs are exactly 0).
    """
    width, _ = w1.shape
    A = w_mu.shape[0]
    assert width % LANE == 0, (
        "width must be a multiple of 128 so the fused pre/pre_c slices stay "
        "lane-tile aligned")

    w1_fused = jnp.concatenate(
        [jnp.asarray(w1, jnp.float32), jnp.asarray(w1_copy, jnp.float32)], axis=0
    ).T.astype(matmul_dtype)                                   # (S, 2*width)

    A_pad = max(LANE, pl.cdiv(A, LANE) * LANE)
    wmu_scaled = jnp.asarray(w_mu, jnp.float32).T * jnp.float32(1.0 / np.sqrt(width))
    wmu_pad = jnp.zeros((width, A_pad), jnp.float32).at[:, :A].set(
        wmu_scaled).astype(matmul_dtype)                       # (width, A_pad)

    scale_pad = jnp.zeros((1, A_pad), jnp.float32).at[0, :A].set(
        jnp.asarray(action_scale, jnp.float32))
    bias_pad = jnp.zeros((1, A_pad), jnp.float32).at[0, :A].set(
        jnp.asarray(action_bias, jnp.float32))
    return w1_fused, wmu_pad, scale_pad, bias_pad, A


# ----------------------------------------------------------------------------- forward
def _grid_vmem_bytes(batch_block, S, W2, width, A_pad, mm_itemsize):
    """Rough VMEM bytes per grid step (double-buffered I/O + f32 intermediates)."""
    io_rows = 2 * (S * 4 + A_pad * 4)                      # x / out, double-buffered
    interm_rows = (W2 + width + A_pad) * 4                  # pre_both, h, mu (f32)
    weights = 2 * (S * W2 + width * A_pad) * mm_itemsize + 2 * A_pad * 4
    est = batch_block * (io_rows + interm_rows) + weights + (1 << 20)
    return int(est * 1.5)                                   # headroom


def actor_forward(x, params, *, gridless_max_batch=2048, batch_block=1024):
    """x: (B, state_dim) float32; params from prepare_actor_params().

    * B <= gridless_max_batch: single gridless block (no pipeline overhead).
      Preferred on single-TC chips (v5e/v6e) whenever VMEM allows.
    * Larger B: batch-parallel grid (>=2 steps so both v7x TensorCores get work);
      ragged batches are zero-padded to a batch_block multiple and sliced.
    VMEM ceiling note: per-row f32 intermediates are ~4 KiB, so keep
    batch_block <~ 8K rows on v7x (64 MiB physical / 32 MiB scoped default) and
    ~2x that on v5e/v6e; vmem_limit_bytes is raised automatically when the
    estimate exceeds the 16 MiB v5e scoped default.
    """
    w1_fused, wmu_pad, scale_pad, bias_pad, A = params
    B, S = x.shape
    W2 = w1_fused.shape[1]
    width, A_pad = wmu_pad.shape
    x = jnp.asarray(x, jnp.float32)

    if B <= gridless_max_batch:
        vmem = pl.BlockSpec(memory_space=pltpu.MemorySpace.VMEM)
        out = pl.pallas_call(
            actor_kernel,
            out_shape=jax.ShapeDtypeStruct((B, A_pad), jnp.float32),
            in_specs=[vmem, vmem, vmem, vmem, vmem],
            out_specs=vmem,
        )(x, w1_fused, wmu_pad, scale_pad, bias_pad)
        return out[:, :A]

    # Rollout-scale batch: parallel grid over batch tiles; weight index_maps
    # return (0, 0) every step so the weights stay VMEM-resident.
    n_blocks = pl.cdiv(B, batch_block)
    B_pad = n_blocks * batch_block
    if B_pad != B:
        x = jnp.pad(x, ((0, B_pad - B), (0, 0)))            # padded rows -> discarded

    vmem_est = _grid_vmem_bytes(batch_block, S, W2, width, A_pad,
                                jnp.dtype(w1_fused.dtype).itemsize)
    cp_kwargs = dict(dimension_semantics=("parallel",))
    if vmem_est > 16 * 1024 * 1024:      # smallest scoped default (v5e)
        cp_kwargs["vmem_limit_bytes"] = vmem_est

    out = pl.pallas_call(
        actor_kernel,
        out_shape=jax.ShapeDtypeStruct((B_pad, A_pad), jnp.float32),
        grid=(n_blocks,),
        in_specs=[
            pl.BlockSpec((batch_block, S), lambda i: (i, 0)),
            pl.BlockSpec((S, W2), lambda i: (0, 0)),
            pl.BlockSpec((width, A_pad), lambda i: (0, 0)),
            pl.BlockSpec((1, A_pad), lambda i: (0, 0)),
            pl.BlockSpec((1, A_pad), lambda i: (0, 0)),
        ],
        out_specs=pl.BlockSpec((batch_block, A_pad), lambda i: (i, 0)),
        compiler_params=pltpu.CompilerParams(**cp_kwargs),
    )(x, w1_fused, wmu_pad, scale_pad, bias_pad)
    return out[:B, :A]


# ----------------------------------------------------------------------------- references
def reference_forward(x, w1, w1_copy, w_mu, action_scale, action_bias):
    """Pure-f32 JAX mirror of the PyTorch forward."""
    width = w1.shape[0]
    pre = x @ w1.T
    pre_c = x @ w1_copy.T
    phi = jnp.exp(-0.5 * pre ** 2) / np.sqrt(2.0 * np.pi)
    Phi = 0.5 * (1.0 + lax.erf(pre / np.sqrt(2.0)))
    g_grad = Phi + pre * phi
    h = pre * Phi + (pre_c - pre) * g_grad
    mu = jnp.tanh((h @ w_mu.T) / np.sqrt(width))
    return mu * action_scale + action_bias


def reference_forward_matched(x, w1, w1_copy, w_mu, action_scale, action_bias,
                              matmul_dtype=jnp.bfloat16):
    """Same math, mirroring the kernel's quantized-operand / f32-accumulate casting."""
    f32 = jnp.float32
    q = lambda a: jnp.asarray(a, f32).astype(matmul_dtype).astype(f32)
    width = w1.shape[0]
    xq = q(x)
    pre = xq @ q(w1).T
    pre_c = xq @ q(w1_copy).T
    phi = jnp.exp(-0.5 * pre ** 2) / np.sqrt(2.0 * np.pi)
    Phi = 0.5 * (1.0 + lax.erf(pre / np.sqrt(2.0)))
    h = Phi * pre_c + (pre * phi) * (pre_c - pre)
    # fold 1/sqrt(width) into the weight before quantization, like the kernel
    wmu_s = q(jnp.asarray(w_mu, f32) / np.sqrt(width))
    mu = jnp.tanh(q(h) @ wmu_s.T)
    return mu * action_scale + action_bias


# ----------------------------------------------------------------------------- test
if __name__ == "__main__":
    # Shapes consistent with the module: obs_dim=32, width=256, act_dim=8.
    S, WIDTH, A = 32, 256, 8

    key = jax.random.PRNGKey(0)
    k_x, k_w1, k_wmu, k_xl, k_wp = jax.random.split(key, 5)

    # nn.init.normal_(fc1.weight, std=1/state_dim); fc1_copy loads the same weights.
    w1 = jax.random.normal(k_w1, (WIDTH, S), dtype=jnp.float32) * (1.0 / S)
    w1_copy = w1
    bound = 1.0 / np.sqrt(WIDTH)
    w_mu = jax.random.uniform(k_wmu, (A, WIDTH), dtype=jnp.float32,
                              minval=-bound, maxval=bound)

    # synthetic action space: low = -2, high = 2 -> scale = 2, bias = 0
    action_low = -2.0 * jnp.ones((A,), jnp.float32)
    action_high = 2.0 * jnp.ones((A,), jnp.float32)
    action_scale = (action_high - action_low) / 2.0
    action_bias = (action_high + action_low) / 2.0

    # --- f32-matmul params (default, accuracy path) ---
    params_f32 = prepare_actor_params(w1, w1_copy, w_mu, action_scale, action_bias,
                                      matmul_dtype=jnp.float32)

    # small batch: gridless single-block path
    B_small = 8
    x_small = jax.random.normal(k_x, (B_small, S), dtype=jnp.float32)
    out_small = jax.block_until_ready(actor_forward(x_small, params_f32))
    assert out_small.shape == (B_small, A)
    ref_f32 = reference_forward(x_small, w1, w1_copy, w_mu, action_scale, action_bias)
    np.testing.assert_allclose(np.asarray(out_small), np.asarray(ref_f32),
                               rtol=2e-2, atol=2e-2)

    # --- bf16-matmul params (throughput path), checked against the matched ref ---
    params_bf16 = prepare_actor_params(w1, w1_copy, w_mu, action_scale, action_bias,
                                       matmul_dtype=jnp.bfloat16)
    out_bf16 = jax.block_until_ready(actor_forward(x_small, params_bf16))
    ref_matched = reference_forward_matched(x_small, w1, w1_copy, w_mu,
                                            action_scale, action_bias,
                                            matmul_dtype=jnp.bfloat16)
    np.testing.assert_allclose(np.asarray(out_bf16), np.asarray(ref_matched),
                               rtol=1e-4, atol=1e-4)

    # --- general case: fc1_copy != fc1 (exercises the linearised-correction path) ---
    w1_copy_b = w1 + 0.01 * jax.random.normal(k_wp, (WIDTH, S), dtype=jnp.float32)
    params_b = prepare_actor_params(w1, w1_copy_b, w_mu, action_scale, action_bias,
                                    matmul_dtype=jnp.float32)
    out_b = jax.block_until_ready(actor_forward(x_small, params_b))
    ref_b = reference_forward(x_small, w1, w1_copy_b, w_mu, action_scale, action_bias)
    np.testing.assert_allclose(np.asarray(out_b), np.asarray(ref_b),
                               rtol=2e-2, atol=2e-2)

    # --- larger / ragged batch: forces the batch-parallel grid path (with padding) ---
    B_big = 300                      # not a multiple of batch_block -> exercises padding
    x_big = jax.random.normal(k_xl, (B_big, S), dtype=jnp.float32)
    out_big = jax.block_until_ready(
        actor_forward(x_big, params_f32, gridless_max_batch=128, batch_block=128))
    assert out_big.shape == (B_big, A)
    ref_big = reference_forward(x_big, w1, w1_copy, w_mu, action_scale, action_bias)
    np.testing.assert_allclose(np.asarray(out_big), np.asarray(ref_big),
                               rtol=2e-2, atol=2e-2)

    print("KERNEL_OK")
</pallas_src>

<mosaic_0001>
module attributes {stable_mosaic.version = 11 : i64} {
  func.func @actor_kernel(%arg0: memref<8x32xf32, #tpu.memory_space<vmem>>, %arg1: memref<32x512xf32, #tpu.memory_space<vmem>>, %arg2: memref<256x128xf32, #tpu.memory_space<vmem>>, %arg3: memref<1x128xf32, #tpu.memory_space<vmem>>, %arg4: memref<1x128xf32, #tpu.memory_space<vmem>>, %arg5: memref<8x128xf32, #tpu.memory_space<vmem>>) attributes {dimension_semantics = [], scalar_prefetch = 0 : i64, scratch_operands = 0 : i64, tpu.core_type = #tpu.core_type<tc>} {
    %c0 = arith.constant 0 : index
    %c0_0 = arith.constant 0 : index
    %0 = vector.load %arg0[%c0, %c0_0] : memref<8x32xf32, #tpu.memory_space<vmem>>, vector<8x32xf32>
    %c0_1 = arith.constant 0 : index
    %c0_2 = arith.constant 0 : index
    %1 = vector.load %arg1[%c0_1, %c0_2] : memref<32x512xf32, #tpu.memory_space<vmem>>, vector<32x512xf32>
    %cst = arith.constant dense<0.000000e+00> : vector<8x512xf32>
    %2 = tpu.matmul %0, %1, %cst {dimension_numbers = #tpu.dot_dimension_numbers<[1], [0], [0], [1], [0, 0, 1, 1], [], []>} : vector<8x32xf32>, vector<32x512xf32>, vector<8x512xf32> -> vector<8x512xf32>
    %3 = vector.extract_strided_slice %2 {offsets = [0, 0], sizes = [8, 256], strides = [1, 1]} : vector<8x512xf32> to vector<8x256xf32>
    %4 = vector.extract_strided_slice %2 {offsets = [0, 256], sizes = [8, 256], strides = [1, 1]} : vector<8x512xf32> to vector<8x256xf32>
    %cst_3 = arith.constant -5.000000e-01 : f32
    %5 = vector.broadcast %cst_3 : f32 to vector<8x256xf32>
    %6 = arith.mulf %5, %3 : vector<8x256xf32>
    %7 = arith.mulf %6, %3 : vector<8x256xf32>
    %8 = math.exp %7 : vector<8x256xf32>
    %cst_4 = arith.constant 0.398942292 : f32
    %9 = vector.broadcast %cst_4 : f32 to vector<8x256xf32>
    %10 = arith.mulf %8, %9 : vector<8x256xf32>
    %cst_5 = arith.constant 0.707106769 : f32
    %11 = vector.broadcast %cst_5 : f32 to vector<8x256xf32>
    %12 = arith.mulf %3, %11 : vector<8x256xf32>
    %13 = math.erf %12 : vector<8x256xf32>
    %cst_6 = arith.constant 1.000000e+00 : f32
    %14 = vector.broadcast %cst_6 : f32 to vector<8x256xf32>
    %15 = arith.addf %14, %13 : vector<8x256xf32>
    %cst_7 = arith.constant 5.000000e-01 : f32
    %16 = vector.broadcast %cst_7 : f32 to vector<8x256xf32>
    %17 = arith.mulf %16, %15 : vector<8x256xf32>
    %18 = arith.mulf %17, %4 : vector<8x256xf32>
    %19 = arith.mulf %3, %10 : vector<8x256xf32>
    %20 = arith.subf %4, %3 : vector<8x256xf32>
    %21 = arith.mulf %19, %20 : vector<8x256xf32>
    %22 = arith.addf %18, %21 : vector<8x256xf32>
    %c0_8 = arith.constant 0 : index
    %c0_9 = arith.constant 0 : index
    %23 = vector.load %arg2[%c0_8, %c0_9] : memref<256x128xf32, #tpu.memory_space<vmem>>, vector<256x128xf32>
    %cst_10 = arith.constant dense<0.000000e+00> : vector<8x128xf32>
    %24 = tpu.matmul %22, %23, %cst_10 {dimension_numbers = #tpu.dot_dimension_numbers<[1], [0], [0], [1], [0, 0, 1, 1], [], []>} : vector<8x256xf32>, vector<256x128xf32>, vector<8x128xf32> -> vector<8x128xf32>
    %25 = math.tanh %24 : vector<8x128xf32>
    %c0_11 = arith.constant 0 : index
    %c0_12 = arith.constant 0 : index
    %26 = vector.load %arg3[%c0_11, %c0_12] : memref<1x128xf32, #tpu.memory_space<vmem>>, vector<1x128xf32>
    %27 = vector.broadcast %26 : vector<1x128xf32> to vector<8x128xf32>
    %28 = arith.mulf %25, %27 : vector<8x128xf32>
    %c0_13 = arith.constant 0 : index
    %c0_14 = arith.constant 0 : index
    %29 = vector.load %arg4[%c0_13, %c0_14] : memref<1x128xf32, #tpu.memory_space<vmem>>, vector<1x128xf32>
    %30 = vector.broadcast %29 : vector<1x128xf32> to vector<8x128xf32>
    %31 = arith.addf %28, %30 : vector<8x128xf32>
    %c0_15 = arith.constant 0 : index
    %c0_16 = arith.constant 0 : index
    %32 = vector.load %arg5[%c0_15, %c0_16] : memref<8x128xf32, #tpu.memory_space<vmem>>, vector<8x128xf32>
    tpu.vector_store %arg5[%c0_15, %c0_16], %31 {strides = array<i32>} : memref<8x128xf32, #tpu.memory_space<vmem>>, vector<8x128xf32>,
    return
  }
}

</mosaic_0001>

<bundles_post_ra>
// kernel: tpu_custom_call.1
= control target key start
LH: loop header
LB: loop body
LE: loop exit
PB: predicated region body
PF: predicated region fallthrough
CT: control target
= control target key end

     0   :  { %10 = vsyncpa [#allocation3], 0  ;;  %s680_s0 = inlined_call_operand.hbm [shape: f32[8,32], index: 0, kind: input, shape index: {}]   ;;  %s681_s1 = inlined_call_operand.hbm [shape: f32[32,512], index: 1, kind: input, shape index: {}]   ;;  %s682_s2 = inlined_call_operand.hbm [shape: f32[256,128], index: 2, kind: input, shape index: {}]   ;;  %s683_s3 = inlined_call_operand.vmem [shape: f32[1,128], index: 3, kind: input, shape index: {}]   ;;  %s684_s4 = inlined_call_operand.vmem [shape: f32[1,128], index: 4, kind: input, shape index: {}]   ;;  %s685_s5 = inlined_call_operand.hbm [shape: f32[8,128], index: 5, kind: output, shape index: {}]  }
   0x1   :  { %11 = vsyncpa [#allocation6], 0 }
   0x2   :  { %12 = vsyncpa [#allocation4], 0  ;;  %s587_s18 = smov [#allocation5]   ;;  %s493_s22 = scalar_lea.hbm %s681_s1, 2048 }
   0x3   :  { %s28_s19 = sshll.u32 %s587_s18, 4  ;;  %p494_p0 = scmp.ne.s32.totalorder %s681_s1, %s493_s22  ;;  %s29_s19 = int_to_ptr.vmem [resolvable:$true] %s28_s19 }
   0x4   :  { %p497_p1 = scmp.lt.u32.totalorder %s493_s22, %s681_s1 }
   0x6   :  { %p499_p2 = pnand %p497_p1, %p494_p0 }
   0x8   :  { %502 = shalt.err (!%p499_p2)
}
   0x9   :  { %s503_s27 = scalar_lea.vmem %s29_s19, 2048  ;;  %p508_p4 = scmp.lt.s32.totalorder %s29_s19, %s29_s19 }
   0xa   :  { %p504_p3 = scmp.ne.s32.totalorder %s29_s19, %s503_s27  ;;  %p509_p5 = scmp.lt.s32.totalorder %s503_s27, %s503_s27 }
   0xc   :  { %p510_p6 = por %p509_p5, %p508_p4 }
   0xe   :  { %p511_p7 = pnand %p510_p6, %p504_p3 }
  0x10   :  { %514 = shalt.err (!%p511_p7)
}
  0x11   :  { %s588_s28 = smov 512   ;;  %s589_s29 = smov 32  }
  0x12   :  { %34 = dma.hbm_to_vmem [thread:$0]  %s681_s1, 2048, %s29_s19, [#allocation6], %s588_s28, %s588_s28, %s589_s29  }
  0x13   :  { %s590_s7 = smov [#allocation2]   ;;  %s591_s9 = smov [#allocation7]  }
  0x14   :  { %s19_s8 = sshll.u32 %s590_s7, 4  ;;  %s40_s10 = sshll.u32 %s591_s9, 4  ;;  %s20_s8 = int_to_ptr.vmem [resolvable:$true] %s19_s8  ;;  %s41_s10 = int_to_ptr.vmem [resolvable:$true] %s40_s10 }
  0x15   :  { %s515_s13 = scalar_lea.hbm %s680_s0, 128 }
  0x16   :  { %p516_p8 = scmp.ne.s32.totalorder %s680_s0, %s515_s13  ;;  %p519_p9 = scmp.lt.u32.totalorder %s515_s13, %s680_s0 }
  0x18   :  { %p521_p10 = pnand %p519_p9, %p516_p8 }
  0x1a   :  { %524 = shalt.err (!%p521_p10)
}
  0x1b   :  { %s525_s1 = scalar_lea.vmem %s20_s8, 128  ;;  %p530_p12 = scmp.lt.s32.totalorder %s20_s8, %s20_s8 }
  0x1c   :  { %p526_p11 = scmp.ne.s32.totalorder %s20_s8, %s525_s1  ;;  %p531_p13 = scmp.lt.s32.totalorder %s525_s1, %s525_s1 }
  0x1e   :  { %p532_p0 = por %p531_p13, %p530_p12 }
  0x20   :  { %p533_p1 = pnand %p532_p0, %p526_p11 }
  0x22   :  { %536 = shalt.err (!%p533_p1)
}
  0x23   :  { %22 = dma.hbm_to_vmem [thread:$0]  %s680_s0, 128, %s20_s8, [#allocation3]  }
  0x24   :  { %s537_s22 = scalar_lea.hbm %s682_s2, 4096 }
  0x25   :  { %p538_p2 = scmp.ne.s32.totalorder %s682_s2, %s537_s22  ;;  %p541_p3 = scmp.lt.u32.totalorder %s537_s22, %s682_s2 }
  0x27   :  { %p543_p4 = pnand %p541_p3, %p538_p2 }
  0x29   :  { %546 = shalt.err (!%p543_p4)
}
  0x2a   :  { %s547_s27 = scalar_lea.vmem %s41_s10, 4096  ;;  %p552_p6 = scmp.lt.s32.totalorder %s41_s10, %s41_s10 }
  0x2b   :  { %p548_p5 = scmp.ne.s32.totalorder %s41_s10, %s547_s27  ;;  %p553_p7 = scmp.lt.s32.totalorder %s547_s27, %s547_s27 }
  0x2d   :  { %p554_p8 = por %p553_p7, %p552_p6 }
  0x2f   :  { %p555_p9 = pnand %p554_p8, %p548_p5 }
  0x31   :  { %558 = shalt.err (!%p555_p9)
}
  0x32   :  { %s592_s0 = smov 128   ;;  %s593_s28 = smov 8  }
  0x33   :  { %46 = dma.hbm_to_vmem [thread:$0]  %s682_s2, 4096, %s41_s10, [#allocation6], %s592_s0, %s592_s0, %s593_s28  }
  0x34   :  { %581 = dma.done.wait [#allocation3], 128  }
  0x35   :  { %582 = vsyncadd [#allocation3], 4294967168 }
  0x36   :  { %583 = dma.done.wait [#allocation6], 6144  }
  0x37   :  { %584 = vsyncadd [#allocation6], 4294961152  ;;  %v594_v0 = vmov 0.0   ;;  %v62_v1 = vld [vmem:[#allocation5 + $0x8] sm:$0xff]  ;;  %v61_v3 = vld [vmem:[#allocation5] sm:$0xff]  ;;  %vm77_vm0 = vcmask 261120  }
  0x38   :  { %145 = vmatprep.mubr.f32.mxu1 %v594_v0  ;;  %v66_v2 = vld [vmem:[#allocation5 + $0x28] sm:$0xff]  ;;  %v65_v5 = vld [vmem:[#allocation5 + $0x20] sm:$0xff]  ;;  %v64_v12 = vld [vmem:[#allocation5 + $0x18] sm:$0xff]  ;;  %s595_s9 = smov [#allocation8]  }
  0x39   :  { %v426_v4 = vpack.c.bf16 %v66_v2, %v62_v1  ;;  %v70_v6 = vld [vmem:[#allocation5 + $0x48] sm:$0xff]  ;;  %v428_v8 = vpack.c.bf16 %v65_v5, %v61_v3  ;;  %v69_v10 = vld [vmem:[#allocation5 + $0x40] sm:$0xff]  ;;  %v68_v13 = vld [vmem:[#allocation5 + $0x38] sm:$0xff]  ;;  %s377_s10 = sshll.u32 %s595_s9, 4  ;;  %s378_s10 = int_to_ptr.vmem [resolvable:$true] %s377_s10 }
  0x3a   :  { %v74_v7 = vld [vmem:[#allocation5 + $0x68] sm:$0xff]  ;;  %v73_v11 = vld [vmem:[#allocation5 + $0x60] sm:$0xff]  ;;  %v63_v15 = vld [vmem:[#allocation5 + $0x10] sm:$0xff]  ;;  %v434_v17 = vpack.c.bf16 %v68_v13, %v64_v12  ;;  %s559_s11 = scalar_lea.vmem %s378_s10, 128  ;;  %p564_p11 = scmp.lt.s32.totalorder %s378_s10, %s378_s10 }
  0x3b   :  { %v430_v9 = vpack.c.bf16 %v74_v7, %v70_v6  ;;  %427 = vmatprep.subr.bf16.mxu1 %v426_v4  ;;  %v432_v14 = vpack.c.bf16 %v73_v11, %v69_v10  ;;  %v67_v16 = vld [vmem:[#allocation5 + $0x30] sm:$0xff]  ;;  %v72_v18 = vld [vmem:[#allocation5 + $0x58] sm:$0xff]  ;;  %v267_v20 = vld [vmem:[#allocation7 + $0x80] sm:$0xff]  ;;  %p560_p10 = scmp.ne.s32.totalorder %s378_s10, %s559_s11  ;;  %p565_p12 = scmp.lt.s32.totalorder %s559_s11, %s559_s11 }
  0x3c   :  { %429 = vmatpush1.bf16.msra.mxu1 %v428_v8  ;;  %v76_v19 = vld [vmem:[#allocation5 + $0x78] sm:$0xff]  ;;  %v268_v21 = vld [vmem:[#allocation7 + $0x88] sm:$0xff]  ;;  %v251_v22 = vld [vmem:[#allocation7] sm:$0xff]  ;;  %v436_v27 = vpack.c.bf16 %v67_v16, %v63_v15 }
  0x3d   :  { %431 = vmatprep.subr.bf16.mxu1 %v430_v9  ;;  %v252_v23 = vld [vmem:[#allocation7 + $0x8] sm:$0xff]  ;;  %v442_v24 = vpack.c.bf16 %v268_v21, %v267_v20  ;;  %v60_v26 = vld [vmem:[#allocation2] sm:$0xff]  ;;  %v438_v28 = vpack.c.bf16 %v76_v19, %v72_v18  ;;  %v71_v29 = vld [vmem:[#allocation5 + $0x50] sm:$0xff]  ;;  %p566_p13 = por %p565_p12, %p564_p11 }
  0x3e   :  { %v444_v25 = vpack.c.bf16 %v252_v23, %v251_v22  ;;  %v75_v30 = vld [vmem:[#allocation5 + $0x70] sm:$0xff]  ;;  %v270_v33 = vld [vmem:[#allocation7 + $0x98] sm:$0xff]  ;;  %v271_v38 = vld [vmem:[#allocation7 + $0xa0] sm:$0xff] }
  0x3f   :  { %443 = vmatprep.subr.bf16.mxu0 %v442_v24  ;;  %v440_v31 = vpack.c.bf16 %v75_v30, %v71_v29  ;;  %v269_v32 = vld [vmem:[#allocation7 + $0x90] sm:$0xff]  ;;  %v254_v36 = vld [vmem:[#allocation7 + $0x18] sm:$0xff]  ;;  %v272_v39 = vld [vmem:[#allocation7 + $0xa8] sm:$0xff]  ;;  %p567_p0 = pnand %p566_p13, %p560_p10 }
  0x40   :  { %433 = vmatpush1.bf16.msra.mxu1 %v432_v14  ;;  %445 = vmatpush3.bf16.msra.mxu0 %v444_v25  ;;  %v446_v34 = vpack.c.bf16 %v270_v33, %v269_v32  ;;  %v253_v35 = vld [vmem:[#allocation7 + $0x10] sm:$0xff]  ;;  %v450_v40 = vpack.c.bf16 %v272_v39, %v271_v38  ;;  %v255_v41 = vld [vmem:[#allocation7 + $0x20] sm:$0xff]  ;;  %v256_v42 = vld [vmem:[#allocation7 + $0x28] sm:$0xff] }
  0x41   :  { %435 = vmatprep.subr.bf16.mxu1 %v434_v17  ;;  %v448_v37 = vpack.c.bf16 %v254_v36, %v253_v35  ;;  %v452_v43 = vpack.c.bf16 %v256_v42, %v255_v41  ;;  %v273_v44 = vld [vmem:[#allocation7 + $0xb0] sm:$0xff]  ;;  %v274_v45 = vld [vmem:[#allocation7 + $0xb8] sm:$0xff]  ;;  %v275_v50 = vld [vmem:[#allocation7 + $0xc0] sm:$0xff] }
  0x42   :  { %447 = vmatprep.subr.bf16.mxu0 %v446_v34  ;;  %v454_v46 = vpack.c.bf16 %v274_v45, %v273_v44  ;;  %v257_v47 = vld [vmem:[#allocation7 + $0x30] sm:$0xff]  ;;  %v258_v48 = vld [vmem:[#allocation7 + $0x38] sm:$0xff]  ;;  %v276_v51 = vld [vmem:[#allocation7 + $0xc8] sm:$0xff] }
  0x43   :  { %387 = vmatmul.mubr.msk.f32.vlgmr.msra.gmra.mrb[0].mxu1 %vm77_vm0, %v60_v26  ;;  %v456_v49 = vpack.c.bf16 %v258_v48, %v257_v47  ;;  %v458_v52 = vpack.c.bf16 %v276_v51, %v275_v50  ;;  %v259_v53 = vld [vmem:[#allocation7 + $0x40] sm:$0xff]  ;;  %v260_v54 = vld [vmem:[#allocation7 + $0x48] sm:$0xff]  ;;  %v277_v56 = vld [vmem:[#allocation7 + $0xd0] sm:$0xff] }
  0x44   :  { %437 = vmatpush1.bf16.msra.mxu1 %v436_v27  ;;  %216 = vmatprep.mubr.f32.mxu1 %v594_v0  ;;  %v460_v55 = vpack.c.bf16 %v260_v54, %v259_v53  ;;  %v278_v57 = vld [vmem:[#allocation7 + $0xd8] sm:$0xff]  ;;  %v261_v59 = vld [vmem:[#allocation7 + $0x50] sm:$0xff]  ;;  %v279_v62 = vld [vmem:[#allocation7 + $0xe0] sm:$0xff] }
  0x45   :  { %439 = vmatprep.subr.bf16.mxu1 %v438_v28  ;;  %449 = vmatpush3.bf16.msra.mxu0 %v448_v37  ;;  %v462_v58 = vpack.c.bf16 %v278_v57, %v277_v56  ;;  %v262_v60 = vld [vmem:[#allocation7 + $0x58] sm:$0xff]  ;;  %v280_v63 = vld [vmem:[#allocation7 + $0xe8] sm:$0xff]  ;;  %v263_v1 = vld [vmem:[#allocation7 + $0x60] sm:$0xff] }
  0x46   :  { %451 = vmatprep.subr.bf16.mxu0 %v450_v40  ;;  %v464_v61 = vpack.c.bf16 %v262_v60, %v261_v59  ;;  %v466_v0 = vpack.c.bf16 %v280_v63, %v279_v62  ;;  %v264_v2 = vld [vmem:[#allocation7 + $0x68] sm:$0xff]  ;;  %v281_v4 = vld [vmem:[#allocation7 + $0xf0] sm:$0xff]  ;;  %v282_v5 = vld [vmem:[#allocation7 + $0xf8] sm:$0xff] }
  0x47   :  { %v468_v3 = vpack.c.bf16 %v264_v2, %v263_v1  ;;  %v470_v6 = vpack.c.bf16 %v282_v5, %v281_v4  ;;  %v265_v7 = vld [vmem:[#allocation7 + $0x70] sm:$0xff]  ;;  %v266_v8 = vld [vmem:[#allocation7 + $0x78] sm:$0xff] }
  0x48   :  { %441 = vmatpush1.bf16.msra.mxu1 %v440_v31  ;;  %v472_v9 = vpack.c.bf16 %v266_v8, %v265_v7  ;;  %v389_v45 = vld [vmem:[%s683_s3] ss:$0 sm:$0xff] }
  0x49   :  { %453 = vmatpush3.bf16.msra.mxu0 %v452_v43  ;;  %v390_v47 = vld [vmem:[%s684_s4] ss:$0 sm:$0xff] }
  0x4a   :  { %455 = vmatprep.subr.bf16.mxu0 %v454_v46 }
  0x4b   :  { %388 = vmatmul.mubr.msk.f32.vlgmr.msra.gmra.mrb[2].mxu1 %vm77_vm0, %v60_v26 }
  0x4d   :  { %457 = vmatpush3.bf16.msra.mxu0 %v456_v49 }
  0x4e   :  { %459 = vmatprep.subr.bf16.mxu0 %v458_v52 }
  0x51   :  { %461 = vmatpush3.bf16.msra.mxu0 %v460_v55 }
  0x52   :  { %463 = vmatprep.subr.bf16.mxu0 %v462_v58 }
  0x55   :  { %465 = vmatpush3.bf16.msra.mxu0 %v464_v61 }
  0x56   :  { %467 = vmatprep.subr.bf16.mxu0 %v466_v0 }
  0x59   :  { %469 = vmatpush3.bf16.msra.mxu0 %v468_v3 }
  0x5a   :  { %471 = vmatprep.subr.bf16.mxu0 %v470_v6 }
  0x5d   :  { %473 = vmatpush3.bf16.msra.mxu0 %v472_v9 }
 0x116   :  { %v147_v10 = vpop.f32.mrb[0].mxu1 }
 0x117   :  { %v223_v11 = vmul.f32 -0.5, %v147_v10  ;;  %v149_v12 = vpop.f32.mrb[1].mxu1  ;;  %v233_v13 = vmul.f32 0.70710677, %v147_v10 }
 0x118   :  { %v224_v14 = vmul.f32 -0.5, %v149_v12  ;;  %v234_v15 = vmul.f32 0.70710677, %v149_v12 }
 0x119   :  { %v225_v16 = vmul.f32 %v223_v11, %v147_v10  ;;  %483 = verf.f32 %v233_v13 }
 0x11a   :  { %v226_v17 = vmul.f32 %v224_v14, %v149_v12  ;;  %485 = verf.f32 %v234_v15 }
 0x11b   :  { %v227_v18 = vmul.f32 1.442695, %v225_v16 }
 0x11c   :  { %v229_v19 = vmul.f32 1.442695, %v226_v17 }
 0x11d   :  { %487 = vpow2.f32 %v227_v18 }
 0x11e   :  { %v218_v20 = vpop.f32.mrb[2].mxu1  ;;  %489 = vpow2.f32 %v229_v19 }
 0x11f   :  { %v245_v21 = vsub.f32 %v218_v20, %v147_v10  ;;  %v220_v22 = vpop.f32.mrb[3].mxu1 }
 0x120   :  { %v246_v23 = vsub.f32 %v220_v22, %v149_v12 }
 0x123   :  { %v484_v24 = vpop.eup %483 }
 0x124   :  { %v486_v25 = vpop.eup %485  ;;  %v237_v26 = vadd.f32 1.0, %v484_v24 }
 0x125   :  { %v238_v27 = vadd.f32 1.0, %v486_v25 }
 0x126   :  { %v239_v28 = vmul.f32 0.5, %v237_v26 }
 0x127   :  { %v488_v29 = vpop.eup %487  ;;  %v240_v30 = vmul.f32 0.5, %v238_v27 }
 0x128   :  { %v490_v31 = vpop.eup %489  ;;  %v231_v32 = vmul.f32 0.3989423, %v488_v29  ;;  %v241_v33 = vmul.f32 %v239_v28, %v218_v20 }
 0x129   :  { %v242_v34 = vmul.f32 %v240_v30, %v220_v22  ;;  %v232_v35 = vmul.f32 0.3989423, %v490_v31 }
 0x12a   :  { %v243_v36 = vmul.f32 %v231_v32, %v147_v10 }
 0x12b   :  { %v244_v37 = vmul.f32 %v232_v35, %v149_v12 }
 0x12c   :  { %v247_v38 = vmul.f32 %v245_v21, %v243_v36 }
 0x12d   :  { %v248_v39 = vmul.f32 %v246_v23, %v244_v37 }
 0x12e   :  { %v249_v40 = vadd.f32 %v247_v38, %v241_v33 }
 0x12f   :  { %v250_v41 = vadd.f32 %v248_v39, %v242_v34 }
 0x131   :  { %347 = vmatprep.mubr.f32.mxu0 %v250_v41 }
 0x132   :  { %348 = vmatmul.mubr.f32.vlgmr.msra.gmra.mrb[0].mxu0 %v249_v40 }
 0x205   :  { %v423_v42 = vpop.f32.mrb[0].mxu0 }
 0x206   :  { %v424_v43 = vpop.f32.mrb[1].mxu0 }
 0x207   :  { %v425_v44 = vadd.f32 %v424_v43, %v423_v42 }
 0x209   :  { %491 = vtanh.f32 %v425_v44 }
 0x213   :  { %v492_v46 = vpop.eup %491 }
 0x214   :  { %v361_v48 = vmul.f32 %v492_v46, %v389_v45 }
 0x216   :  { %v369_v49 = vadd.f32 %v390_v47, %v361_v48 }
 0x218   :  { %370 = vst [vmem:[#allocation8] sm:$0xff] %v369_v49 }
 0x219   :  { %570 = shalt.err (!%p567_p0)
}
 0x21a   :  { %s571_s13 = scalar_lea.hbm %s685_s5, 128 }
 0x21b   :  { %p572_p1 = scmp.ne.s32.totalorder %s685_s5, %s571_s13  ;;  %p575_p2 = scmp.lt.u32.totalorder %s571_s13, %s685_s5 }
 0x21d   :  { %p577_p3 = pnand %p575_p2, %p572_p1 }
 0x21f   :  { %580 = shalt.err (!%p577_p3)
}
 0x220   :  { %380 = dma.vmem_to_hbm [thread:$0]  %s378_s10, 128, %s685_s5, [#allocation4]  }
 0x221   :  { %585 = dma.done.wait [#allocation4], 128  }
 0x222   :  { %586 = vsyncadd [#allocation4], 4294967168 }
 0x223   :  { %384 = vsyncpa [#allocation3], 1 }
 0x224   :  { %385 = vsyncpa [#allocation6], 1 }
 0x225   :  { %386 = vsyncpa [#allocation4], 1 }

</bundles_post_ra>
